<compile_context>
chip_gen: v5e
topology: v5e:2x2
jax: 0.10.0
libtpu: 0.0.40
codegen_flags: <defaults>
</compile_context>

<pallas_src>
import functools

import numpy as np
import jax
import jax.numpy as jnp
from jax.experimental import pallas as pl
from jax.experimental.pallas import tpu as pltpu

_LANE = 128
_SUBLANE = 8
_B_SMALL = 8    # heliostats gathered per grid step (small problems)
_B_LARGE = 32   # heliostats gathered per grid step (large problems)


def _gather_kernel(idx_ref, cnt_ref, src_hbm, out_ref, sems):
    """Gather B packed heliostat rows per grid step, DMA-ing straight into out_ref.

    idx_ref : (capacity,) int32 in SMEM (scalar prefetch) -- gather indices.
    cnt_ref : (1,)        int32 in SMEM (scalar prefetch) -- number of real rows.
    src_hbm : (N, R, 128) packed per-heliostat slab, left in HBM (pl.ANY).
    out_ref : (B, R, 128) VMEM output block (auto-pipelined write-back to HBM);
              the manual gather DMAs land directly in it (no scratch staging).
    sems    : (B,) DMA semaphores.
    """
    b = out_ref.shape[0]
    base = pl.program_id(0) * b
    cnt = cnt_ref[0]

    # Static unroll: issue all (real) gather DMAs so they are in flight
    # concurrently, then wait.  Padding rows (base + j >= cnt) are skipped;
    # their out_ref rows are never consumed (results are sliced to cnt).
    for j in range(b):
        @pl.when(base + j < cnt)
        def _start(j=j):
            pltpu.make_async_copy(
                src_hbm.at[idx_ref[base + j]], out_ref.at[j], sems.at[j]
            ).start()

    for j in range(b):
        @pl.when(base + j < cnt)
        def _wait(j=j):
            pltpu.make_async_copy(
                src_hbm.at[idx_ref[base + j]], out_ref.at[j], sems.at[j]
            ).wait()
    # TODO(synk): coalescing contiguous index runs into multi-row DMAs (sorted
    # repeat_interleave output) needs dynamic-length copies; not expressible
    # with static block shapes here, left as a future optimization.


def _gather_packed(packed, indices, num_active, b):
    """Gather rows of `packed` (N, R, 128) according to `indices` (capacity,).

    `capacity` (static) must be a multiple of `b`.
    """
    n, r, lanes = packed.shape
    capacity = indices.shape[0]
    itemsize = packed.dtype.itemsize
    block_bytes = int(b * r * lanes * itemsize)
    bytes_accessed = int(2 * capacity * r * lanes * itemsize)
    # Output is double-buffered by the pipeline; leave generous headroom but
    # stay under v7x's 64 MiB physical VMEM.
    vmem_limit = int(min(56 << 20, max(16 << 20, 4 * block_bytes + (2 << 20))))

    return pl.pallas_call(
        _gather_kernel,
        out_shape=jax.ShapeDtypeStruct((capacity, r, lanes), packed.dtype),
        grid_spec=pltpu.PrefetchScalarGridSpec(
            num_scalar_prefetch=2,
            grid=(capacity // b,),
            # Keep the big slab in HBM; we DMA from it manually.
            in_specs=[pl.BlockSpec(memory_space=pl.ANY)],
            out_specs=pl.BlockSpec((b, r, lanes), lambda s, idx, cnt: (s, 0, 0)),
            scratch_shapes=[pltpu.SemaphoreType.DMA((b,))],
        ),
        compiler_params=pltpu.CompilerParams(
            dimension_semantics=("parallel",),  # independent steps -> v7x 2 TCs
            vmem_limit_bytes=vmem_limit,
        ),
        cost_estimate=pl.CostEstimate(
            flops=0, transcendentals=0, bytes_accessed=bytes_accessed),
    )(indices, num_active, packed)


@functools.partial(jax.jit, static_argnames=("layout", "capacity", "b"))
def _activate_on_device(packed, mask, *, layout, capacity, b):
    """Build gather indices on device, run the Pallas gather, unpack the views."""
    n = packed.shape[0]
    idx = jnp.repeat(jnp.arange(n, dtype=jnp.int32), mask,
                     total_repeat_length=capacity)
    idx = jnp.clip(idx, 0, n - 1).astype(jnp.int32)
    cnt = jnp.sum(mask).astype(jnp.int32).reshape((1,))
    gathered = _gather_packed(packed, idx, cnt, b)
    flat = gathered.reshape(capacity, -1)
    return tuple(
        flat[:, off:off + width].reshape((capacity,) + shape)
        for off, width, shape in layout
    )


class HeliostatGroup:
    """JAX/Pallas port of the ARTIST HeliostatGroup (activate_heliostats hot path)."""

    def __init__(self, names, positions, aim_points, surface_points, surface_normals,
                 initial_orientations, kinematic_deviation_parameters, actuator_parameters):
        self.number_of_heliostats = len(names)
        self.names = names
        self.positions = positions                                             # (N, 1, 4)
        self.aim_points = aim_points                                           # (N, 1, 4), stored only
        self.surface_points = surface_points                                   # (N, P, 4)
        self.surface_normals = surface_normals                                 # (N, P, 4)
        self.initial_orientations = initial_orientations                       # (N, 1, 4)
        self.kinematic_deviation_parameters = kinematic_deviation_parameters   # (N, 1, 18)
        self.actuator_parameters = actuator_parameters                         # (N, 2, 7)

        self.number_of_active_heliostats = 0
        self.active_heliostats_mask = jnp.ones((self.number_of_heliostats,), dtype=jnp.int32)
        self.active_surface_points = jnp.zeros_like(self.surface_points)
        self.active_surface_normals = jnp.zeros_like(self.surface_normals)
        self.preferred_reflection_directions = jnp.zeros(
            (self.number_of_heliostats, 4), dtype=jnp.float32)

        # Pack the six per-heliostat tensors once into a single lane-dense slab
        # (N, R, 128), with R a multiple of 8 so each row is a whole number of
        # (8,128) tiles: one contiguous, tile-aligned gather DMA per heliostat.
        n = self.number_of_heliostats
        parts = (
            self.surface_points,
            self.surface_normals,
            self.positions,
            self.initial_orientations,
            self.kinematic_deviation_parameters,
            self.actuator_parameters,
        )
        layout = []
        flats = []
        off = 0
        for t in parts:
            width = int(np.prod(t.shape[1:]))
            layout.append((off, width, tuple(int(d) for d in t.shape[1:])))
            # NOTE: packed payload is float32 (matches the f32 inputs here); a
            # non-f32 input dtype would be cast at pack time.
            flats.append(jnp.asarray(t, dtype=jnp.float32).reshape(n, width))
            off += width
        flat = jnp.concatenate(flats, axis=1)
        tile = _SUBLANE * _LANE
        d_pad = ((off + tile - 1) // tile) * tile
        flat = jnp.pad(flat, ((0, 0), (0, d_pad - off)))
        self._packed = flat.reshape(n, d_pad // _LANE, _LANE)   # (N, R, 128), R % 8 == 0
        self._layout = tuple(layout)

    def activate_heliostats(self, active_heliostats_mask=None, capacity=None):
        """Select + repeat per-heliostat tensors according to the mask (repeat_interleave)."""
        n = self.number_of_heliostats
        if active_heliostats_mask is None:
            active_heliostats_mask = np.ones(n, dtype=np.int32)
        mask_np = np.asarray(active_heliostats_mask, dtype=np.int32)
        # NOTE: like torch's .item() in the original, deriving the active count
        # forces a host sync; `capacity` pins the compiled output shape so calls
        # with masks of similar size reuse the same compiled kernel.
        num_active = int(mask_np.sum())

        self.number_of_active_heliostats = num_active
        self.active_heliostats_mask = jnp.asarray(mask_np)

        if np.all(mask_np == 1):
            # Fast path: repeat_interleave with an all-ones mask is the identity.
            self.active_surface_points = self.surface_points
            self.active_surface_normals = self.surface_normals
            self.active_heliostat_positions = self.positions
            self.active_initial_orientations = self.initial_orientations
            self.active_deviation_parameters = self.kinematic_deviation_parameters
            self.active_actuator_parameters = self.actuator_parameters
            return

        if capacity is None:
            capacity = num_active
        capacity = max(capacity, num_active)
        # Big problems: 32 rows/step (amortizes per-step overhead) while the
        # grid still has >= 4 steps so v7x can use both TensorCores.
        b = _B_LARGE if capacity >= 4 * _B_LARGE else _B_SMALL
        capacity = max(b, ((capacity + b - 1) // b) * b)

        outs = _activate_on_device(self._packed, jnp.asarray(mask_np),
                                   layout=self._layout, capacity=capacity, b=b)
        sp, sn, pos, ori, dev, act = [o[:num_active] for o in outs]

        self.active_surface_points = sp
        self.active_surface_normals = sn
        self.active_heliostat_positions = pos
        self.active_initial_orientations = ori
        self.active_deviation_parameters = dev
        self.active_actuator_parameters = act

    def forward(self):
        # TODO(synk): abstract base class -- forward() raises NotImplementedError in PyTorch.
        raise NotImplementedError("Must be overridden!")


if __name__ == "__main__":
    key = jax.random.PRNGKey(0)
    N = 6       # heliostats in the group
    P = 64      # surface points per heliostat
    DDEV = 18   # kinematic deviation parameters
    AACT, PACT = 2, 7  # actuators per heliostat, parameters per actuator

    keys = jax.random.split(key, 7)
    positions = jax.random.normal(keys[0], (N, 1, 4), dtype=jnp.float32)
    aim_points = jax.random.normal(keys[1], (N, 1, 4), dtype=jnp.float32)
    surface_points = jax.random.normal(keys[2], (N, P, 4), dtype=jnp.float32)
    surface_normals = jax.random.normal(keys[3], (N, P, 4), dtype=jnp.float32)
    initial_orientations = jax.random.normal(keys[4], (N, 1, 4), dtype=jnp.float32)
    kinematic_deviation_parameters = jax.random.normal(keys[5], (N, 1, DDEV), dtype=jnp.float32)
    actuator_parameters = jax.random.normal(keys[6], (N, AACT, PACT), dtype=jnp.float32)

    group = HeliostatGroup(
        names=[f"heliostat_{i}" for i in range(N)],
        positions=positions,
        aim_points=aim_points,
        surface_points=surface_points,
        surface_normals=surface_normals,
        initial_orientations=initial_orientations,
        kinematic_deviation_parameters=kinematic_deviation_parameters,
        actuator_parameters=actuator_parameters,
    )

    def ref_repeat(x, mask_j, total):
        return jnp.repeat(x, mask_j, axis=0, total_repeat_length=total)

    def check(group, mask):
        A = int(np.asarray(mask).sum())
        mask_j = jnp.asarray(np.asarray(mask, dtype=np.int32))
        pairs = [
            (group.active_surface_points, surface_points),
            (group.active_surface_normals, surface_normals),
            (group.active_heliostat_positions, positions),
            (group.active_initial_orientations, initial_orientations),
            (group.active_deviation_parameters, kinematic_deviation_parameters),
            (group.active_actuator_parameters, actuator_parameters),
        ]
        for got, src in pairs:
            want = ref_repeat(src, mask_j, A) if A > 0 else src[:0]
            np.testing.assert_allclose(np.asarray(got), np.asarray(want), rtol=0, atol=0)
        assert group.number_of_active_heliostats == A

    # 1) Non-trivial mask with a pinned capacity (16) -> kernel path, 2 grid
    #    steps, padding tail skipped via pl.when.
    mask = np.array([1, 0, 2, 1, 0, 3], dtype=np.int32)   # sum = 7
    group.activate_heliostats(mask, capacity=16)
    jax.block_until_ready(group.active_surface_points)
    jax.block_until_ready(group.active_actuator_parameters)
    check(group, mask)

    # 2) Default mask (all heliostats once) -> identity fast path (no kernel).
    group.activate_heliostats()
    jax.block_until_ready(group.active_surface_points)
    check(group, np.ones(N, dtype=np.int32))

    # 3) Sparse mask, auto capacity (padded to 8) -> kernel path, 1 grid step.
    mask2 = np.array([0, 1, 0, 0, 1, 0], dtype=np.int32)  # sum = 2
    group.activate_heliostats(mask2)
    jax.block_until_ready(group.active_surface_points)
    check(group, mask2)

    print("KERNEL_OK")
</pallas_src>

<mosaic_0001>
module attributes {stable_mosaic.version = 11 : i64} {
  func.func @_gather_kernel(%arg0: i32, %arg1: memref<16xi32, #tpu.memory_space<smem>>, %arg2: memref<1xi32, #tpu.memory_space<smem>>, %arg3: memref<6x8x128xf32, #tpu.memory_space<any>>, %arg4: memref<8x8x128xf32, #tpu.memory_space<vmem>>, %arg5: memref<8x!tpu.dma_semaphore, #tpu.memory_space<semaphore_mem>>) attributes {dimension_semantics = [#tpu.dimension_semantics<parallel>], iteration_bounds = array<i64: 2>, scalar_prefetch = 2 : i64, scratch_operands = 1 : i64, tpu.core_type = #tpu.core_type<tc>, window_params = [{}, {transform_indices = @transform_1, window_bounds = array<i64: 8, 8, 128>}]} {
    %c8_i32 = arith.constant 8 : i32
    %0 = arith.muli %arg0, %c8_i32 : i32
    %c0 = arith.constant 0 : index
    %1 = memref.load %arg2[%c0] : memref<1xi32, #tpu.memory_space<smem>>
    %c0_i32 = arith.constant 0 : i32
    %2 = arith.addi %0, %c0_i32 : i32
    %3 = arith.cmpi slt, %2, %1 : i32
    %4 = arith.extui %3 : i1 to i32
    %c0_i32_0 = arith.constant 0 : i32
    %5 = arith.cmpi ne, %4, %c0_i32_0 : i32
    scf.if %5 {
      %c0_i32_24 = arith.constant 0 : i32
      %66 = arith.addi %0, %c0_i32_24 : i32
      %67 = arith.index_cast %66 : i32 to index
      %68 = memref.load %arg1[%67] : memref<16xi32, #tpu.memory_space<smem>>
      %c0_i32_25 = arith.constant 0 : i32
      %c0_i32_26 = arith.constant 0 : i32
      %c0_i32_27 = arith.constant 0 : i32
      %c0_i32_28 = arith.constant 0 : i32
      %69 = tpu.memref_slice %arg3[%68, %c0_i32_27, %c0_i32_28] : memref<6x8x128xf32, #tpu.memory_space<any>> -> memref<1x8x128xf32, #tpu.memory_space<any>>
      %70 = tpu.memref_squeeze %69 : memref<1x8x128xf32, #tpu.memory_space<any>> -> memref<8x128xf32, #tpu.memory_space<any>>
      %c0_i32_29 = arith.constant 0 : i32
      %c0_i32_30 = arith.constant 0 : i32
      %71 = tpu.memref_slice %arg4[%c0_i32_25, %c0_i32_29, %c0_i32_30] : memref<8x8x128xf32, #tpu.memory_space<vmem>> -> memref<1x8x128xf32, #tpu.memory_space<vmem>>
      %72 = tpu.memref_squeeze %71 : memref<1x8x128xf32, #tpu.memory_space<vmem>> -> memref<8x128xf32, #tpu.memory_space<vmem>>
      %73 = tpu.memref_slice %arg5[%c0_i32_26] : memref<8x!tpu.dma_semaphore, #tpu.memory_space<semaphore_mem>> -> memref<1x!tpu.dma_semaphore, #tpu.memory_space<semaphore_mem>>
      %74 = tpu.memref_squeeze %73 : memref<1x!tpu.dma_semaphore, #tpu.memory_space<semaphore_mem>> -> memref<!tpu.dma_semaphore, #tpu.memory_space<semaphore_mem>>
      tpu.enqueue_dma source(%70 : memref<8x128xf32, #tpu.memory_space<any>>) target(%72 : memref<8x128xf32, #tpu.memory_space<vmem>>) target_semaphore(%74 : memref<!tpu.dma_semaphore, #tpu.memory_space<semaphore_mem>>)
    } else {
    }
    %c1_i32 = arith.constant 1 : i32
    %6 = arith.addi %0, %c1_i32 : i32
    %7 = arith.cmpi slt, %6, %1 : i32
    %8 = arith.extui %7 : i1 to i32
    %c0_i32_1 = arith.constant 0 : i32
    %9 = arith.cmpi ne, %8, %c0_i32_1 : i32
    scf.if %9 {
      %c1_i32_24 = arith.constant 1 : i32
      %66 = arith.addi %0, %c1_i32_24 : i32
      %67 = arith.index_cast %66 : i32 to index
      %68 = memref.load %arg1[%67] : memref<16xi32, #tpu.memory_space<smem>>
      %c1_i32_25 = arith.constant 1 : i32
      %c1_i32_26 = arith.constant 1 : i32
      %c0_i32_27 = arith.constant 0 : i32
      %c0_i32_28 = arith.constant 0 : i32
      %69 = tpu.memref_slice %arg3[%68, %c0_i32_27, %c0_i32_28] : memref<6x8x128xf32, #tpu.memory_space<any>> -> memref<1x8x128xf32, #tpu.memory_space<any>>
      %70 = tpu.memref_squeeze %69 : memref<1x8x128xf32, #tpu.memory_space<any>> -> memref<8x128xf32, #tpu.memory_space<any>>
      %c0_i32_29 = arith.constant 0 : i32
      %c0_i32_30 = arith.constant 0 : i32
      %71 = tpu.memref_slice %arg4[%c1_i32_25, %c0_i32_29, %c0_i32_30] : memref<8x8x128xf32, #tpu.memory_space<vmem>> -> memref<1x8x128xf32, #tpu.memory_space<vmem>>
      %72 = tpu.memref_squeeze %71 : memref<1x8x128xf32, #tpu.memory_space<vmem>> -> memref<8x128xf32, #tpu.memory_space<vmem>>
      %73 = tpu.memref_slice %arg5[%c1_i32_26] : memref<8x!tpu.dma_semaphore, #tpu.memory_space<semaphore_mem>> -> memref<1x!tpu.dma_semaphore, #tpu.memory_space<semaphore_mem>>
      %74 = tpu.memref_squeeze %73 : memref<1x!tpu.dma_semaphore, #tpu.memory_space<semaphore_mem>> -> memref<!tpu.dma_semaphore, #tpu.memory_space<semaphore_mem>>
      tpu.enqueue_dma source(%70 : memref<8x128xf32, #tpu.memory_space<any>>) target(%72 : memref<8x128xf32, #tpu.memory_space<vmem>>) target_semaphore(%74 : memref<!tpu.dma_semaphore, #tpu.memory_space<semaphore_mem>>)
    } else {
    }
    %c2_i32 = arith.constant 2 : i32
    %10 = arith.addi %0, %c2_i32 : i32
    %11 = arith.cmpi slt, %10, %1 : i32
    %12 = arith.extui %11 : i1 to i32
    %c0_i32_2 = arith.constant 0 : i32
    %13 = arith.cmpi ne, %12, %c0_i32_2 : i32
    scf.if %13 {
      %c2_i32_24 = arith.constant 2 : i32
      %66 = arith.addi %0, %c2_i32_24 : i32
      %67 = arith.index_cast %66 : i32 to index
      %68 = memref.load %arg1[%67] : memref<16xi32, #tpu.memory_space<smem>>
      %c2_i32_25 = arith.constant 2 : i32
      %c2_i32_26 = arith.constant 2 : i32
      %c0_i32_27 = arith.constant 0 : i32
      %c0_i32_28 = arith.constant 0 : i32
      %69 = tpu.memref_slice %arg3[%68, %c0_i32_27, %c0_i32_28] : memref<6x8x128xf32, #tpu.memory_space<any>> -> memref<1x8x128xf32, #tpu.memory_space<any>>
      %70 = tpu.memref_squeeze %69 : memref<1x8x128xf32, #tpu.memory_space<any>> -> memref<8x128xf32, #tpu.memory_space<any>>
      %c0_i32_29 = arith.constant 0 : i32
      %c0_i32_30 = arith.constant 0 : i32
      %71 = tpu.memref_slice %arg4[%c2_i32_25, %c0_i32_29, %c0_i32_30] : memref<8x8x128xf32, #tpu.memory_space<vmem>> -> memref<1x8x128xf32, #tpu.memory_space<vmem>>
      %72 = tpu.memref_squeeze %71 : memref<1x8x128xf32, #tpu.memory_space<vmem>> -> memref<8x128xf32, #tpu.memory_space<vmem>>
      %73 = tpu.memref_slice %arg5[%c2_i32_26] : memref<8x!tpu.dma_semaphore, #tpu.memory_space<semaphore_mem>> -> memref<1x!tpu.dma_semaphore, #tpu.memory_space<semaphore_mem>>
      %74 = tpu.memref_squeeze %73 : memref<1x!tpu.dma_semaphore, #tpu.memory_space<semaphore_mem>> -> memref<!tpu.dma_semaphore, #tpu.memory_space<semaphore_mem>>
      tpu.enqueue_dma source(%70 : memref<8x128xf32, #tpu.memory_space<any>>) target(%72 : memref<8x128xf32, #tpu.memory_space<vmem>>) target_semaphore(%74 : memref<!tpu.dma_semaphore, #tpu.memory_space<semaphore_mem>>)
    } else {
    }
    %c3_i32 = arith.constant 3 : i32
    %14 = arith.addi %0, %c3_i32 : i32
    %15 = arith.cmpi slt, %14, %1 : i32
    %16 = arith.extui %15 : i1 to i32
    %c0_i32_3 = arith.constant 0 : i32
    %17 = arith.cmpi ne, %16, %c0_i32_3 : i32
    scf.if %17 {
      %c3_i32_24 = arith.constant 3 : i32
      %66 = arith.addi %0, %c3_i32_24 : i32
      %67 = arith.index_cast %66 : i32 to index
      %68 = memref.load %arg1[%67] : memref<16xi32, #tpu.memory_space<smem>>
      %c3_i32_25 = arith.constant 3 : i32
      %c3_i32_26 = arith.constant 3 : i32
      %c0_i32_27 = arith.constant 0 : i32
      %c0_i32_28 = arith.constant 0 : i32
      %69 = tpu.memref_slice %arg3[%68, %c0_i32_27, %c0_i32_28] : memref<6x8x128xf32, #tpu.memory_space<any>> -> memref<1x8x128xf32, #tpu.memory_space<any>>
      %70 = tpu.memref_squeeze %69 : memref<1x8x128xf32, #tpu.memory_space<any>> -> memref<8x128xf32, #tpu.memory_space<any>>
      %c0_i32_29 = arith.constant 0 : i32
      %c0_i32_30 = arith.constant 0 : i32
      %71 = tpu.memref_slice %arg4[%c3_i32_25, %c0_i32_29, %c0_i32_30] : memref<8x8x128xf32, #tpu.memory_space<vmem>> -> memref<1x8x128xf32, #tpu.memory_space<vmem>>
      %72 = tpu.memref_squeeze %71 : memref<1x8x128xf32, #tpu.memory_space<vmem>> -> memref<8x128xf32, #tpu.memory_space<vmem>>
      %73 = tpu.memref_slice %arg5[%c3_i32_26] : memref<8x!tpu.dma_semaphore, #tpu.memory_space<semaphore_mem>> -> memref<1x!tpu.dma_semaphore, #tpu.memory_space<semaphore_mem>>
      %74 = tpu.memref_squeeze %73 : memref<1x!tpu.dma_semaphore, #tpu.memory_space<semaphore_mem>> -> memref<!tpu.dma_semaphore, #tpu.memory_space<semaphore_mem>>
      tpu.enqueue_dma source(%70 : memref<8x128xf32, #tpu.memory_space<any>>) target(%72 : memref<8x128xf32, #tpu.memory_space<vmem>>) target_semaphore(%74 : memref<!tpu.dma_semaphore, #tpu.memory_space<semaphore_mem>>)
    } else {
    }
    %c4_i32 = arith.constant 4 : i32
    %18 = arith.addi %0, %c4_i32 : i32
    %19 = arith.cmpi slt, %18, %1 : i32
    %20 = arith.extui %19 : i1 to i32
    %c0_i32_4 = arith.constant 0 : i32
    %21 = arith.cmpi ne, %20, %c0_i32_4 : i32
    scf.if %21 {
      %c4_i32_24 = arith.constant 4 : i32
      %66 = arith.addi %0, %c4_i32_24 : i32
      %67 = arith.index_cast %66 : i32 to index
      %68 = memref.load %arg1[%67] : memref<16xi32, #tpu.memory_space<smem>>
      %c4_i32_25 = arith.constant 4 : i32
      %c4_i32_26 = arith.constant 4 : i32
      %c0_i32_27 = arith.constant 0 : i32
      %c0_i32_28 = arith.constant 0 : i32
      %69 = tpu.memref_slice %arg3[%68, %c0_i32_27, %c0_i32_28] : memref<6x8x128xf32, #tpu.memory_space<any>> -> memref<1x8x128xf32, #tpu.memory_space<any>>
      %70 = tpu.memref_squeeze %69 : memref<1x8x128xf32, #tpu.memory_space<any>> -> memref<8x128xf32, #tpu.memory_space<any>>
      %c0_i32_29 = arith.constant 0 : i32
      %c0_i32_30 = arith.constant 0 : i32
      %71 = tpu.memref_slice %arg4[%c4_i32_25, %c0_i32_29, %c0_i32_30] : memref<8x8x128xf32, #tpu.memory_space<vmem>> -> memref<1x8x128xf32, #tpu.memory_space<vmem>>
      %72 = tpu.memref_squeeze %71 : memref<1x8x128xf32, #tpu.memory_space<vmem>> -> memref<8x128xf32, #tpu.memory_space<vmem>>
      %73 = tpu.memref_slice %arg5[%c4_i32_26] : memref<8x!tpu.dma_semaphore, #tpu.memory_space<semaphore_mem>> -> memref<1x!tpu.dma_semaphore, #tpu.memory_space<semaphore_mem>>
      %74 = tpu.memref_squeeze %73 : memref<1x!tpu.dma_semaphore, #tpu.memory_space<semaphore_mem>> -> memref<!tpu.dma_semaphore, #tpu.memory_space<semaphore_mem>>
      tpu.enqueue_dma source(%70 : memref<8x128xf32, #tpu.memory_space<any>>) target(%72 : memref<8x128xf32, #tpu.memory_space<vmem>>) target_semaphore(%74 : memref<!tpu.dma_semaphore, #tpu.memory_space<semaphore_mem>>)
    } else {
    }
    %c5_i32 = arith.constant 5 : i32
    %22 = arith.addi %0, %c5_i32 : i32
    %23 = arith.cmpi slt, %22, %1 : i32
    %24 = arith.extui %23 : i1 to i32
    %c0_i32_5 = arith.constant 0 : i32
    %25 = arith.cmpi ne, %24, %c0_i32_5 : i32
    scf.if %25 {
      %c5_i32_24 = arith.constant 5 : i32
      %66 = arith.addi %0, %c5_i32_24 : i32
      %67 = arith.index_cast %66 : i32 to index
      %68 = memref.load %arg1[%67] : memref<16xi32, #tpu.memory_space<smem>>
      %c5_i32_25 = arith.constant 5 : i32
      %c5_i32_26 = arith.constant 5 : i32
      %c0_i32_27 = arith.constant 0 : i32
      %c0_i32_28 = arith.constant 0 : i32
      %69 = tpu.memref_slice %arg3[%68, %c0_i32_27, %c0_i32_28] : memref<6x8x128xf32, #tpu.memory_space<any>> -> memref<1x8x128xf32, #tpu.memory_space<any>>
      %70 = tpu.memref_squeeze %69 : memref<1x8x128xf32, #tpu.memory_space<any>> -> memref<8x128xf32, #tpu.memory_space<any>>
      %c0_i32_29 = arith.constant 0 : i32
      %c0_i32_30 = arith.constant 0 : i32
      %71 = tpu.memref_slice %arg4[%c5_i32_25, %c0_i32_29, %c0_i32_30] : memref<8x8x128xf32, #tpu.memory_space<vmem>> -> memref<1x8x128xf32, #tpu.memory_space<vmem>>
      %72 = tpu.memref_squeeze %71 : memref<1x8x128xf32, #tpu.memory_space<vmem>> -> memref<8x128xf32, #tpu.memory_space<vmem>>
      %73 = tpu.memref_slice %arg5[%c5_i32_26] : memref<8x!tpu.dma_semaphore, #tpu.memory_space<semaphore_mem>> -> memref<1x!tpu.dma_semaphore, #tpu.memory_space<semaphore_mem>>
      %74 = tpu.memref_squeeze %73 : memref<1x!tpu.dma_semaphore, #tpu.memory_space<semaphore_mem>> -> memref<!tpu.dma_semaphore, #tpu.memory_space<semaphore_mem>>
      tpu.enqueue_dma source(%70 : memref<8x128xf32, #tpu.memory_space<any>>) target(%72 : memref<8x128xf32, #tpu.memory_space<vmem>>) target_semaphore(%74 : memref<!tpu.dma_semaphore, #tpu.memory_space<semaphore_mem>>)
    } else {
    }
    %c6_i32 = arith.constant 6 : i32
    %26 = arith.addi %0, %c6_i32 : i32
    %27 = arith.cmpi slt, %26, %1 : i32
    %28 = arith.extui %27 : i1 to i32
    %c0_i32_6 = arith.constant 0 : i32
    %29 = arith.cmpi ne, %28, %c0_i32_6 : i32
    scf.if %29 {
      %c6_i32_24 = arith.constant 6 : i32
      %66 = arith.addi %0, %c6_i32_24 : i32
      %67 = arith.index_cast %66 : i32 to index
      %68 = memref.load %arg1[%67] : memref<16xi32, #tpu.memory_space<smem>>
      %c6_i32_25 = arith.constant 6 : i32
      %c6_i32_26 = arith.constant 6 : i32
      %c0_i32_27 = arith.constant 0 : i32
      %c0_i32_28 = arith.constant 0 : i32
      %69 = tpu.memref_slice %arg3[%68, %c0_i32_27, %c0_i32_28] : memref<6x8x128xf32, #tpu.memory_space<any>> -> memref<1x8x128xf32, #tpu.memory_space<any>>
      %70 = tpu.memref_squeeze %69 : memref<1x8x128xf32, #tpu.memory_space<any>> -> memref<8x128xf32, #tpu.memory_space<any>>
      %c0_i32_29 = arith.constant 0 : i32
      %c0_i32_30 = arith.constant 0 : i32
      %71 = tpu.memref_slice %arg4[%c6_i32_25, %c0_i32_29, %c0_i32_30] : memref<8x8x128xf32, #tpu.memory_space<vmem>> -> memref<1x8x128xf32, #tpu.memory_space<vmem>>
      %72 = tpu.memref_squeeze %71 : memref<1x8x128xf32, #tpu.memory_space<vmem>> -> memref<8x128xf32, #tpu.memory_space<vmem>>
      %73 = tpu.memref_slice %arg5[%c6_i32_26] : memref<8x!tpu.dma_semaphore, #tpu.memory_space<semaphore_mem>> -> memref<1x!tpu.dma_semaphore, #tpu.memory_space<semaphore_mem>>
      %74 = tpu.memref_squeeze %73 : memref<1x!tpu.dma_semaphore, #tpu.memory_space<semaphore_mem>> -> memref<!tpu.dma_semaphore, #tpu.memory_space<semaphore_mem>>
      tpu.enqueue_dma source(%70 : memref<8x128xf32, #tpu.memory_space<any>>) target(%72 : memref<8x128xf32, #tpu.memory_space<vmem>>) target_semaphore(%74 : memref<!tpu.dma_semaphore, #tpu.memory_space<semaphore_mem>>)
    } else {
    }
    %c7_i32 = arith.constant 7 : i32
    %30 = arith.addi %0, %c7_i32 : i32
    %31 = arith.cmpi slt, %30, %1 : i32
    %32 = arith.extui %31 : i1 to i32
    %c0_i32_7 = arith.constant 0 : i32
    %33 = arith.cmpi ne, %32, %c0_i32_7 : i32
    scf.if %33 {
      %c7_i32_24 = arith.constant 7 : i32
      %66 = arith.addi %0, %c7_i32_24 : i32
      %67 = arith.index_cast %66 : i32 to index
      %68 = memref.load %arg1[%67] : memref<16xi32, #tpu.memory_space<smem>>
      %c7_i32_25 = arith.constant 7 : i32
      %c7_i32_26 = arith.constant 7 : i32
      %c0_i32_27 = arith.constant 0 : i32
      %c0_i32_28 = arith.constant 0 : i32
      %69 = tpu.memref_slice %arg3[%68, %c0_i32_27, %c0_i32_28] : memref<6x8x128xf32, #tpu.memory_space<any>> -> memref<1x8x128xf32, #tpu.memory_space<any>>
      %70 = tpu.memref_squeeze %69 : memref<1x8x128xf32, #tpu.memory_space<any>> -> memref<8x128xf32, #tpu.memory_space<any>>
      %c0_i32_29 = arith.constant 0 : i32
      %c0_i32_30 = arith.constant 0 : i32
      %71 = tpu.memref_slice %arg4[%c7_i32_25, %c0_i32_29, %c0_i32_30] : memref<8x8x128xf32, #tpu.memory_space<vmem>> -> memref<1x8x128xf32, #tpu.memory_space<vmem>>
      %72 = tpu.memref_squeeze %71 : memref<1x8x128xf32, #tpu.memory_space<vmem>> -> memref<8x128xf32, #tpu.memory_space<vmem>>
      %73 = tpu.memref_slice %arg5[%c7_i32_26] : memref<8x!tpu.dma_semaphore, #tpu.memory_space<semaphore_mem>> -> memref<1x!tpu.dma_semaphore, #tpu.memory_space<semaphore_mem>>
      %74 = tpu.memref_squeeze %73 : memref<1x!tpu.dma_semaphore, #tpu.memory_space<semaphore_mem>> -> memref<!tpu.dma_semaphore, #tpu.memory_space<semaphore_mem>>
      tpu.enqueue_dma source(%70 : memref<8x128xf32, #tpu.memory_space<any>>) target(%72 : memref<8x128xf32, #tpu.memory_space<vmem>>) target_semaphore(%74 : memref<!tpu.dma_semaphore, #tpu.memory_space<semaphore_mem>>)
    } else {
    }
    %c0_i32_8 = arith.constant 0 : i32
    %34 = arith.addi %0, %c0_i32_8 : i32
    %35 = arith.cmpi slt, %34, %1 : i32
    %36 = arith.extui %35 : i1 to i32
    %c0_i32_9 = arith.constant 0 : i32
    %37 = arith.cmpi ne, %36, %c0_i32_9 : i32
    scf.if %37 {
      %c0_i32_24 = arith.constant 0 : i32
      %66 = arith.addi %0, %c0_i32_24 : i32
      %67 = arith.index_cast %66 : i32 to index
      %68 = memref.load %arg1[%67] : memref<16xi32, #tpu.memory_space<smem>>
      %c0_i32_25 = arith.constant 0 : i32
      %c0_i32_26 = arith.constant 0 : i32
      %c0_i32_27 = arith.constant 0 : i32
      %c0_i32_28 = arith.constant 0 : i32
      %69 = tpu.memref_slice %arg3[%68, %c0_i32_27, %c0_i32_28] : memref<6x8x128xf32, #tpu.memory_space<any>> -> memref<1x8x128xf32, #tpu.memory_space<any>>
      %70 = tpu.memref_squeeze %69 : memref<1x8x128xf32, #tpu.memory_space<any>> -> memref<8x128xf32, #tpu.memory_space<any>>
      %c0_i32_29 = arith.constant 0 : i32
      %c0_i32_30 = arith.constant 0 : i32
      %71 = tpu.memref_slice %arg4[%c0_i32_25, %c0_i32_29, %c0_i32_30] : memref<8x8x128xf32, #tpu.memory_space<vmem>> -> memref<1x8x128xf32, #tpu.memory_space<vmem>>
      %72 = tpu.memref_squeeze %71 : memref<1x8x128xf32, #tpu.memory_space<vmem>> -> memref<8x128xf32, #tpu.memory_space<vmem>>
      %73 = tpu.memref_slice %arg5[%c0_i32_26] : memref<8x!tpu.dma_semaphore, #tpu.memory_space<semaphore_mem>> -> memref<1x!tpu.dma_semaphore, #tpu.memory_space<semaphore_mem>>
      %74 = tpu.memref_squeeze %73 : memref<1x!tpu.dma_semaphore, #tpu.memory_space<semaphore_mem>> -> memref<!tpu.dma_semaphore, #tpu.memory_space<semaphore_mem>>
      tpu.wait_dma2 semaphore(%74 : memref<!tpu.dma_semaphore, #tpu.memory_space<semaphore_mem>>) src(%70 : memref<8x128xf32, #tpu.memory_space<any>>) dst(%72 : memref<8x128xf32, #tpu.memory_space<vmem>>)
    } else {
    }
    %c1_i32_10 = arith.constant 1 : i32
    %38 = arith.addi %0, %c1_i32_10 : i32
    %39 = arith.cmpi slt, %38, %1 : i32
    %40 = arith.extui %39 : i1 to i32
    %c0_i32_11 = arith.constant 0 : i32
    %41 = arith.cmpi ne, %40, %c0_i32_11 : i32
    scf.if %41 {
      %c1_i32_24 = arith.constant 1 : i32
      %66 = arith.addi %0, %c1_i32_24 : i32
      %67 = arith.index_cast %66 : i32 to index
      %68 = memref.load %arg1[%67] : memref<16xi32, #tpu.memory_space<smem>>
      %c1_i32_25 = arith.constant 1 : i32
      %c1_i32_26 = arith.constant 1 : i32
      %c0_i32_27 = arith.constant 0 : i32
      %c0_i32_28 = arith.constant 0 : i32
      %69 = tpu.memref_slice %arg3[%68, %c0_i32_27, %c0_i32_28] : memref<6x8x128xf32, #tpu.memory_space<any>> -> memref<1x8x128xf32, #tpu.memory_space<any>>
      %70 = tpu.memref_squeeze %69 : memref<1x8x128xf32, #tpu.memory_space<any>> -> memref<8x128xf32, #tpu.memory_space<any>>
      %c0_i32_29 = arith.constant 0 : i32
      %c0_i32_30 = arith.constant 0 : i32
      %71 = tpu.memref_slice %arg4[%c1_i32_25, %c0_i32_29, %c0_i32_30] : memref<8x8x128xf32, #tpu.memory_space<vmem>> -> memref<1x8x128xf32, #tpu.memory_space<vmem>>
      %72 = tpu.memref_squeeze %71 : memref<1x8x128xf32, #tpu.memory_space<vmem>> -> memref<8x128xf32, #tpu.memory_space<vmem>>
      %73 = tpu.memref_slice %arg5[%c1_i32_26] : memref<8x!tpu.dma_semaphore, #tpu.memory_space<semaphore_mem>> -> memref<1x!tpu.dma_semaphore, #tpu.memory_space<semaphore_mem>>
      %74 = tpu.memref_squeeze %73 : memref<1x!tpu.dma_semaphore, #tpu.memory_space<semaphore_mem>> -> memref<!tpu.dma_semaphore, #tpu.memory_space<semaphore_mem>>
      tpu.wait_dma2 semaphore(%74 : memref<!tpu.dma_semaphore, #tpu.memory_space<semaphore_mem>>) src(%70 : memref<8x128xf32, #tpu.memory_space<any>>) dst(%72 : memref<8x128xf32, #tpu.memory_space<vmem>>)
    } else {
    }
    %c2_i32_12 = arith.constant 2 : i32
    %42 = arith.addi %0, %c2_i32_12 : i32
    %43 = arith.cmpi slt, %42, %1 : i32
    %44 = arith.extui %43 : i1 to i32
    %c0_i32_13 = arith.constant 0 : i32
    %45 = arith.cmpi ne, %44, %c0_i32_13 : i32
    scf.if %45 {
      %c2_i32_24 = arith.constant 2 : i32
      %66 = arith.addi %0, %c2_i32_24 : i32
      %67 = arith.index_cast %66 : i32 to index
      %68 = memref.load %arg1[%67] : memref<16xi32, #tpu.memory_space<smem>>
      %c2_i32_25 = arith.constant 2 : i32
      %c2_i32_26 = arith.constant 2 : i32
      %c0_i32_27 = arith.constant 0 : i32
      %c0_i32_28 = arith.constant 0 : i32
      %69 = tpu.memref_slice %arg3[%68, %c0_i32_27, %c0_i32_28] : memref<6x8x128xf32, #tpu.memory_space<any>> -> memref<1x8x128xf32, #tpu.memory_space<any>>
      %70 = tpu.memref_squeeze %69 : memref<1x8x128xf32, #tpu.memory_space<any>> -> memref<8x128xf32, #tpu.memory_space<any>>
      %c0_i32_29 = arith.constant 0 : i32
      %c0_i32_30 = arith.constant 0 : i32
      %71 = tpu.memref_slice %arg4[%c2_i32_25, %c0_i32_29, %c0_i32_30] : memref<8x8x128xf32, #tpu.memory_space<vmem>> -> memref<1x8x128xf32, #tpu.memory_space<vmem>>
      %72 = tpu.memref_squeeze %71 : memref<1x8x128xf32, #tpu.memory_space<vmem>> -> memref<8x128xf32, #tpu.memory_space<vmem>>
      %73 = tpu.memref_slice %arg5[%c2_i32_26] : memref<8x!tpu.dma_semaphore, #tpu.memory_space<semaphore_mem>> -> memref<1x!tpu.dma_semaphore, #tpu.memory_space<semaphore_mem>>
      %74 = tpu.memref_squeeze %73 : memref<1x!tpu.dma_semaphore, #tpu.memory_space<semaphore_mem>> -> memref<!tpu.dma_semaphore, #tpu.memory_space<semaphore_mem>>
      tpu.wait_dma2 semaphore(%74 : memref<!tpu.dma_semaphore, #tpu.memory_space<semaphore_mem>>) src(%70 : memref<8x128xf32, #tpu.memory_space<any>>) dst(%72 : memref<8x128xf32, #tpu.memory_space<vmem>>)
    } else {
    }
    %c3_i32_14 = arith.constant 3 : i32
    %46 = arith.addi %0, %c3_i32_14 : i32
    %47 = arith.cmpi slt, %46, %1 : i32
    %48 = arith.extui %47 : i1 to i32
    %c0_i32_15 = arith.constant 0 : i32
    %49 = arith.cmpi ne, %48, %c0_i32_15 : i32
    scf.if %49 {
      %c3_i32_24 = arith.constant 3 : i32
      %66 = arith.addi %0, %c3_i32_24 : i32
      %67 = arith.index_cast %66 : i32 to index
      %68 = memref.load %arg1[%67] : memref<16xi32, #tpu.memory_space<smem>>
      %c3_i32_25 = arith.constant 3 : i32
      %c3_i32_26 = arith.constant 3 : i32
      %c0_i32_27 = arith.constant 0 : i32
      %c0_i32_28 = arith.constant 0 : i32
      %69 = tpu.memref_slice %arg3[%68, %c0_i32_27, %c0_i32_28] : memref<6x8x128xf32, #tpu.memory_space<any>> -> memref<1x8x128xf32, #tpu.memory_space<any>>
      %70 = tpu.memref_squeeze %69 : memref<1x8x128xf32, #tpu.memory_space<any>> -> memref<8x128xf32, #tpu.memory_space<any>>
      %c0_i32_29 = arith.constant 0 : i32
      %c0_i32_30 = arith.constant 0 : i32
      %71 = tpu.memref_slice %arg4[%c3_i32_25, %c0_i32_29, %c0_i32_30] : memref<8x8x128xf32, #tpu.memory_space<vmem>> -> memref<1x8x128xf32, #tpu.memory_space<vmem>>
      %72 = tpu.memref_squeeze %71 : memref<1x8x128xf32, #tpu.memory_space<vmem>> -> memref<8x128xf32, #tpu.memory_space<vmem>>
      %73 = tpu.memref_slice %arg5[%c3_i32_26] : memref<8x!tpu.dma_semaphore, #tpu.memory_space<semaphore_mem>> -> memref<1x!tpu.dma_semaphore, #tpu.memory_space<semaphore_mem>>
      %74 = tpu.memref_squeeze %73 : memref<1x!tpu.dma_semaphore, #tpu.memory_space<semaphore_mem>> -> memref<!tpu.dma_semaphore, #tpu.memory_space<semaphore_mem>>
      tpu.wait_dma2 semaphore(%74 : memref<!tpu.dma_semaphore, #tpu.memory_space<semaphore_mem>>) src(%70 : memref<8x128xf32, #tpu.memory_space<any>>) dst(%72 : memref<8x128xf32, #tpu.memory_space<vmem>>)
    } else {
    }
    %c4_i32_16 = arith.constant 4 : i32
    %50 = arith.addi %0, %c4_i32_16 : i32
    %51 = arith.cmpi slt, %50, %1 : i32
    %52 = arith.extui %51 : i1 to i32
    %c0_i32_17 = arith.constant 0 : i32
    %53 = arith.cmpi ne, %52, %c0_i32_17 : i32
    scf.if %53 {
      %c4_i32_24 = arith.constant 4 : i32
      %66 = arith.addi %0, %c4_i32_24 : i32
      %67 = arith.index_cast %66 : i32 to index
      %68 = memref.load %arg1[%67] : memref<16xi32, #tpu.memory_space<smem>>
      %c4_i32_25 = arith.constant 4 : i32
      %c4_i32_26 = arith.constant 4 : i32
      %c0_i32_27 = arith.constant 0 : i32
      %c0_i32_28 = arith.constant 0 : i32
      %69 = tpu.memref_slice %arg3[%68, %c0_i32_27, %c0_i32_28] : memref<6x8x128xf32, #tpu.memory_space<any>> -> memref<1x8x128xf32, #tpu.memory_space<any>>
      %70 = tpu.memref_squeeze %69 : memref<1x8x128xf32, #tpu.memory_space<any>> -> memref<8x128xf32, #tpu.memory_space<any>>
      %c0_i32_29 = arith.constant 0 : i32
      %c0_i32_30 = arith.constant 0 : i32
      %71 = tpu.memref_slice %arg4[%c4_i32_25, %c0_i32_29, %c0_i32_30] : memref<8x8x128xf32, #tpu.memory_space<vmem>> -> memref<1x8x128xf32, #tpu.memory_space<vmem>>
      %72 = tpu.memref_squeeze %71 : memref<1x8x128xf32, #tpu.memory_space<vmem>> -> memref<8x128xf32, #tpu.memory_space<vmem>>
      %73 = tpu.memref_slice %arg5[%c4_i32_26] : memref<8x!tpu.dma_semaphore, #tpu.memory_space<semaphore_mem>> -> memref<1x!tpu.dma_semaphore, #tpu.memory_space<semaphore_mem>>
      %74 = tpu.memref_squeeze %73 : memref<1x!tpu.dma_semaphore, #tpu.memory_space<semaphore_mem>> -> memref<!tpu.dma_semaphore, #tpu.memory_space<semaphore_mem>>
      tpu.wait_dma2 semaphore(%74 : memref<!tpu.dma_semaphore, #tpu.memory_space<semaphore_mem>>) src(%70 : memref<8x128xf32, #tpu.memory_space<any>>) dst(%72 : memref<8x128xf32, #tpu.memory_space<vmem>>)
    } else {
    }
    %c5_i32_18 = arith.constant 5 : i32
    %54 = arith.addi %0, %c5_i32_18 : i32
    %55 = arith.cmpi slt, %54, %1 : i32
    %56 = arith.extui %55 : i1 to i32
    %c0_i32_19 = arith.constant 0 : i32
    %57 = arith.cmpi ne, %56, %c0_i32_19 : i32
    scf.if %57 {
      %c5_i32_24 = arith.constant 5 : i32
      %66 = arith.addi %0, %c5_i32_24 : i32
      %67 = arith.index_cast %66 : i32 to index
      %68 = memref.load %arg1[%67] : memref<16xi32, #tpu.memory_space<smem>>
      %c5_i32_25 = arith.constant 5 : i32
      %c5_i32_26 = arith.constant 5 : i32
      %c0_i32_27 = arith.constant 0 : i32
      %c0_i32_28 = arith.constant 0 : i32
      %69 = tpu.memref_slice %arg3[%68, %c0_i32_27, %c0_i32_28] : memref<6x8x128xf32, #tpu.memory_space<any>> -> memref<1x8x128xf32, #tpu.memory_space<any>>
      %70 = tpu.memref_squeeze %69 : memref<1x8x128xf32, #tpu.memory_space<any>> -> memref<8x128xf32, #tpu.memory_space<any>>
      %c0_i32_29 = arith.constant 0 : i32
      %c0_i32_30 = arith.constant 0 : i32
      %71 = tpu.memref_slice %arg4[%c5_i32_25, %c0_i32_29, %c0_i32_30] : memref<8x8x128xf32, #tpu.memory_space<vmem>> -> memref<1x8x128xf32, #tpu.memory_space<vmem>>
      %72 = tpu.memref_squeeze %71 : memref<1x8x128xf32, #tpu.memory_space<vmem>> -> memref<8x128xf32, #tpu.memory_space<vmem>>
      %73 = tpu.memref_slice %arg5[%c5_i32_26] : memref<8x!tpu.dma_semaphore, #tpu.memory_space<semaphore_mem>> -> memref<1x!tpu.dma_semaphore, #tpu.memory_space<semaphore_mem>>
      %74 = tpu.memref_squeeze %73 : memref<1x!tpu.dma_semaphore, #tpu.memory_space<semaphore_mem>> -> memref<!tpu.dma_semaphore, #tpu.memory_space<semaphore_mem>>
      tpu.wait_dma2 semaphore(%74 : memref<!tpu.dma_semaphore, #tpu.memory_space<semaphore_mem>>) src(%70 : memref<8x128xf32, #tpu.memory_space<any>>) dst(%72 : memref<8x128xf32, #tpu.memory_space<vmem>>)
    } else {
    }
    %c6_i32_20 = arith.constant 6 : i32
    %58 = arith.addi %0, %c6_i32_20 : i32
    %59 = arith.cmpi slt, %58, %1 : i32
    %60 = arith.extui %59 : i1 to i32
    %c0_i32_21 = arith.constant 0 : i32
    %61 = arith.cmpi ne, %60, %c0_i32_21 : i32
    scf.if %61 {
      %c6_i32_24 = arith.constant 6 : i32
      %66 = arith.addi %0, %c6_i32_24 : i32
      %67 = arith.index_cast %66 : i32 to index
      %68 = memref.load %arg1[%67] : memref<16xi32, #tpu.memory_space<smem>>
      %c6_i32_25 = arith.constant 6 : i32
      %c6_i32_26 = arith.constant 6 : i32
      %c0_i32_27 = arith.constant 0 : i32
      %c0_i32_28 = arith.constant 0 : i32
      %69 = tpu.memref_slice %arg3[%68, %c0_i32_27, %c0_i32_28] : memref<6x8x128xf32, #tpu.memory_space<any>> -> memref<1x8x128xf32, #tpu.memory_space<any>>
      %70 = tpu.memref_squeeze %69 : memref<1x8x128xf32, #tpu.memory_space<any>> -> memref<8x128xf32, #tpu.memory_space<any>>
      %c0_i32_29 = arith.constant 0 : i32
      %c0_i32_30 = arith.constant 0 : i32
      %71 = tpu.memref_slice %arg4[%c6_i32_25, %c0_i32_29, %c0_i32_30] : memref<8x8x128xf32, #tpu.memory_space<vmem>> -> memref<1x8x128xf32, #tpu.memory_space<vmem>>
      %72 = tpu.memref_squeeze %71 : memref<1x8x128xf32, #tpu.memory_space<vmem>> -> memref<8x128xf32, #tpu.memory_space<vmem>>
      %73 = tpu.memref_slice %arg5[%c6_i32_26] : memref<8x!tpu.dma_semaphore, #tpu.memory_space<semaphore_mem>> -> memref<1x!tpu.dma_semaphore, #tpu.memory_space<semaphore_mem>>
      %74 = tpu.memref_squeeze %73 : memref<1x!tpu.dma_semaphore, #tpu.memory_space<semaphore_mem>> -> memref<!tpu.dma_semaphore, #tpu.memory_space<semaphore_mem>>
      tpu.wait_dma2 semaphore(%74 : memref<!tpu.dma_semaphore, #tpu.memory_space<semaphore_mem>>) src(%70 : memref<8x128xf32, #tpu.memory_space<any>>) dst(%72 : memref<8x128xf32, #tpu.memory_space<vmem>>)
    } else {
    }
    %c7_i32_22 = arith.constant 7 : i32
    %62 = arith.addi %0, %c7_i32_22 : i32
    %63 = arith.cmpi slt, %62, %1 : i32
    %64 = arith.extui %63 : i1 to i32
    %c0_i32_23 = arith.constant 0 : i32
    %65 = arith.cmpi ne, %64, %c0_i32_23 : i32
    scf.if %65 {
      %c7_i32_24 = arith.constant 7 : i32
      %66 = arith.addi %0, %c7_i32_24 : i32
      %67 = arith.index_cast %66 : i32 to index
      %68 = memref.load %arg1[%67] : memref<16xi32, #tpu.memory_space<smem>>
      %c7_i32_25 = arith.constant 7 : i32
      %c7_i32_26 = arith.constant 7 : i32
      %c0_i32_27 = arith.constant 0 : i32
      %c0_i32_28 = arith.constant 0 : i32
      %69 = tpu.memref_slice %arg3[%68, %c0_i32_27, %c0_i32_28] : memref<6x8x128xf32, #tpu.memory_space<any>> -> memref<1x8x128xf32, #tpu.memory_space<any>>
      %70 = tpu.memref_squeeze %69 : memref<1x8x128xf32, #tpu.memory_space<any>> -> memref<8x128xf32, #tpu.memory_space<any>>
      %c0_i32_29 = arith.constant 0 : i32
      %c0_i32_30 = arith.constant 0 : i32
      %71 = tpu.memref_slice %arg4[%c7_i32_25, %c0_i32_29, %c0_i32_30] : memref<8x8x128xf32, #tpu.memory_space<vmem>> -> memref<1x8x128xf32, #tpu.memory_space<vmem>>
      %72 = tpu.memref_squeeze %71 : memref<1x8x128xf32, #tpu.memory_space<vmem>> -> memref<8x128xf32, #tpu.memory_space<vmem>>
      %73 = tpu.memref_slice %arg5[%c7_i32_26] : memref<8x!tpu.dma_semaphore, #tpu.memory_space<semaphore_mem>> -> memref<1x!tpu.dma_semaphore, #tpu.memory_space<semaphore_mem>>
      %74 = tpu.memref_squeeze %73 : memref<1x!tpu.dma_semaphore, #tpu.memory_space<semaphore_mem>> -> memref<!tpu.dma_semaphore, #tpu.memory_space<semaphore_mem>>
      tpu.wait_dma2 semaphore(%74 : memref<!tpu.dma_semaphore, #tpu.memory_space<semaphore_mem>>) src(%70 : memref<8x128xf32, #tpu.memory_space<any>>) dst(%72 : memref<8x128xf32, #tpu.memory_space<vmem>>)
    } else {
    }
    return
  }
  func.func @transform_1(%arg0: i32, %arg1: memref<16xi32, #tpu.memory_space<smem>>, %arg2: memref<1xi32, #tpu.memory_space<smem>>) -> (i32, i32, i32) {
    %c0_i32 = arith.constant 0 : i32
    %c0_i32_0 = arith.constant 0 : i32
    %c0_i32_1 = arith.constant 0 : i32
    return %arg0, %c0_i32, %c0_i32_0 : i32, i32, i32
  }
}

</mosaic_0001>

<bundles_post_ra>
// kernel: _activate_on_device.1
= control target key start
LH: loop header
LB: loop body
LE: loop exit
PB: predicated region body
PF: predicated region fallthrough
CT: control target
= control target key end

     0   :  { %s753_s17 = smov [#allocation4]   ;;  %s894_s0 = inlined_call_operand.vmem [shape: s32[16], index: 0, kind: input, shape index: {}]   ;;  %s895_s1 = inlined_call_operand.<no memory space> [shape: s32[1], index: 1, kind: input, shape index: {}]   ;;  %s896_s2 = inlined_call_operand.vmem [shape: f32[6,8,128], index: 2, kind: input, shape index: {}]   ;;  %s897_s3 = inlined_call_operand.vmem [shape: f32[16,8,128], index: 3, kind: output, shape index: {}]  }
   0x1   :  { %s9_s14 = sshll.u32 %s894_s0, 4  ;;  %13 = sst [smem:[#allocation5]] %s895_s1  ;;  %s10_s14 = int_to_ptr.vmem [resolvable:$true] %s9_s14 }
   0x2   :  { %12 = dma.vmem_to_smem %s10_s14, 16, %s753_s17, [#allocation3] }
   0x3   :  { %715 = dma.done.wait [#allocation3], 16 }
   0x4   :  { %716 = vsyncadd [#allocation3], 4294967280 }
   0x5   :  { %16 = sfence }
   0x6   :  { %s780_s18 = smov 0  }
   0x7 LB: > { %p621_p0 = scmp.ge.s32.totalorder %s751_s18, 2  ;;  %s751_s18 = sphi %s780_s18, %s22_s18  }
   0x8   : > { %s787_s0 = sshll.u32 (!%p621_p0), %s751_s18, 3  ;;  %s789_s1 = sld [smem:[#allocation5]] (!%p621_p0) }
   0x9   : > { %47 = sbr.rel (%p621_p0) target bundleno = 143 (0x8f), region = 12  ;;  %p56_p1 = scmp.lt.s32.totalorder (!%p621_p0), %s787_s0, 15 }
   0xe   : > { %s57_s19 = scalar_select %p56_p1, %s787_s0, 15 }
   0xf   : > { %p625_p2 = scmp.ge.s32.totalorder %s787_s0, %s789_s1 }
  0x10   : > { %s623_s20 = sshll.u32 %s57_s19, 3  ;;  %s67_s24 = sld [smem:[#allocation4 + %s787_s0]] (!%p625_p2) }
  0x11   : > { %s796_s23 = scalar_lea.vmem %s897_s3, %s623_s20  ;;  %66 = sbr.rel (%p625_p2) target bundleno = 27 (0x1b), region = 16 }
  0x16   : > { %s626_s25 = sshll.u32 %s67_s24, 3 }
  0x17   : > { %s69_s28 = scalar_lea.vmem %s896_s2, %s626_s25 }
  0x18   : > { %v96_v0 = vld [vmem:[%s69_s28] sm:$0xff] }
  0x19   : > { %97 = vst [vmem:[%s796_s23] sm:$0xff] %v96_v0 }
  0x1a   : > { %103 = vsyncadd [#allocation2], 128 }
  0x1b PF: > { %s806_s29 = sadd.s32 1, %s787_s0 }
  0x1c   : > { %p627_p3 = scmp.ge.s32.totalorder %s806_s29, %s789_s1 }
  0x1d   : > { %s109_s30 = sld [smem:[#allocation4 + %s806_s29]] (!%p627_p3) }
  0x1e   : > { %108 = sbr.rel (%p627_p3) target bundleno = 40 (0x28), region = 54 }
  0x23   : > { %s628_s4 = sshll.u32 %s109_s30, 3 }
  0x24   : > { %s111_s7 = scalar_lea.vmem %s896_s2, %s628_s4 }
  0x25   : > { %v140_v1 = vld [vmem:[%s111_s7] sm:$0xff] }
  0x26   : > { %629 = vst [vmem:[%s796_s23 + $0x8] sm:$0xff] %v140_v1 }
  0x27   : > { %147 = vsyncadd [#allocation2 + $0x1], 128 }
  0x28 PF: > { %s816_s8 = sadd.s32 2, %s787_s0 }
  0x29   : > { %p630_p4 = scmp.ge.s32.totalorder %s816_s8, %s789_s1 }
  0x2a   : > { %s153_s9 = sld [smem:[#allocation4 + %s816_s8]] (!%p630_p4) }
  0x2b   : > { %152 = sbr.rel (%p630_p4) target bundleno = 53 (0x35), region = 92 }
  0x30   : > { %s631_s10 = sshll.u32 %s153_s9, 3 }
  0x31   : > { %s155_s13 = scalar_lea.vmem %s896_s2, %s631_s10 }
  0x32   : > { %v184_v2 = vld [vmem:[%s155_s13] sm:$0xff] }
  0x33   : > { %632 = vst [vmem:[%s796_s23 + $0x10] sm:$0xff] %v184_v2 }
  0x34   : > { %191 = vsyncadd [#allocation2 + $0x2], 128 }
  0x35 PF: > { %s826_s14 = sadd.s32 3, %s787_s0 }
  0x36   : > { %p633_p5 = scmp.ge.s32.totalorder %s826_s14, %s789_s1 }
  0x37   : > { %s197_s15 = sld [smem:[#allocation4 + %s826_s14]] (!%p633_p5) }
  0x38   : > { %196 = sbr.rel (%p633_p5) target bundleno = 66 (0x42), region = 130 }
  0x3d   : > { %s634_s16 = sshll.u32 %s197_s15, 3 }
  0x3e   : > { %s199_s20 = scalar_lea.vmem %s896_s2, %s634_s16 }
  0x3f   : > { %v228_v3 = vld [vmem:[%s199_s20] sm:$0xff] }
  0x40   : > { %635 = vst [vmem:[%s796_s23 + $0x18] sm:$0xff] %v228_v3 }
  0x41   : > { %235 = vsyncadd [#allocation2 + $0x3], 128 }
  0x42 PF: > { %s836_s21 = sadd.s32 4, %s787_s0 }
  0x43   : > { %p636_p6 = scmp.ge.s32.totalorder %s836_s21, %s789_s1 }
  0x44   : > { %s241_s22 = sld [smem:[#allocation4 + %s836_s21]] (!%p636_p6) }
  0x45   : > { %240 = sbr.rel (%p636_p6) target bundleno = 79 (0x4f), region = 168 }
  0x4a   : > { %s637_s24 = sshll.u32 %s241_s22, 3 }
  0x4b   : > { %s243_s27 = scalar_lea.vmem %s896_s2, %s637_s24 }
  0x4c   : > { %v272_v4 = vld [vmem:[%s243_s27] sm:$0xff] }
  0x4d   : > { %638 = vst [vmem:[%s796_s23 + $0x20] sm:$0xff] %v272_v4 }
  0x4e   : > { %279 = vsyncadd [#allocation2 + $0x4], 128 }
  0x4f PF: > { %s846_s28 = sadd.s32 5, %s787_s0 }
  0x50   : > { %p639_p7 = scmp.ge.s32.totalorder %s846_s28, %s789_s1 }
  0x51   : > { %s285_s30 = sld [smem:[#allocation4 + %s846_s28]] (!%p639_p7) }
  0x52   : > { %284 = sbr.rel (%p639_p7) target bundleno = 92 (0x5c), region = 206 }
  0x57   : > { %s640_s4 = sshll.u32 %s285_s30, 3 }
  0x58   : > { %s287_s7 = scalar_lea.vmem %s896_s2, %s640_s4 }
  0x59   : > { %v316_v5 = vld [vmem:[%s287_s7] sm:$0xff] }
  0x5a   : > { %641 = vst [vmem:[%s796_s23 + $0x28] sm:$0xff] %v316_v5 }
  0x5b   : > { %323 = vsyncadd [#allocation2 + $0x5], 128 }
  0x5c PF: > { %s856_s9 = sadd.s32 6, %s787_s0 }
  0x5d   : > { %p642_p8 = scmp.ge.s32.totalorder %s856_s9, %s789_s1 }
  0x5e   : > { %s329_s10 = sld [smem:[#allocation4 + %s856_s9]] (!%p642_p8) }
  0x5f   : > { %328 = sbr.rel (%p642_p8) target bundleno = 105 (0x69), region = 244 }
  0x64   : > { %s643_s11 = sshll.u32 %s329_s10, 3 }
  0x65   : > { %s331_s15 = scalar_lea.vmem %s896_s2, %s643_s11 }
  0x66   : > { %v360_v6 = vld [vmem:[%s331_s15] sm:$0xff] }
  0x67   : > { %644 = vst [vmem:[%s796_s23 + $0x30] sm:$0xff] %v360_v6 }
  0x68   : > { %367 = vsyncadd [#allocation2 + $0x6], 128 }
  0x69 PF: > { %s866_s16 = sadd.s32 7, %s787_s0 }
  0x6a   : > { %p645_p9 = scmp.ge.s32.totalorder %s866_s16, %s789_s1 }
  0x6b   : > { %s373_s17 = sld [smem:[#allocation4 + %s866_s16]] (!%p645_p9) }
  0x6c   : > { %372 = sbr.rel (%p645_p9) target bundleno = 118 (0x76), region = 282 }
  0x71   : > { %s646_s19 = sshll.u32 %s373_s17, 3 }
  0x72   : > { %s375_s24 = scalar_lea.vmem %s896_s2, %s646_s19 }
  0x73   : > { %v404_v7 = vld [vmem:[%s375_s24] sm:$0xff] }
  0x74   : > { %647 = vst [vmem:[%s796_s23 + $0x38] sm:$0xff] %v404_v7 }
  0x75   : > { %411 = vsyncadd [#allocation2 + $0x7], 128 }
  0x76 PF: > { %p682_p10 = scmp.lt.s32.totalorder %s787_s0, %s789_s1 }
  0x78   : > { %718 = dma.done.wait (%p682_p10), [#allocation2], 128 }
  0x79   : > { %720 = vsyncadd (%p682_p10), [#allocation2], 4294967168  ;;  %p683_p11 = scmp.lt.s32.totalorder %s806_s29, %s789_s1 }
  0x7b   : > { %722 = dma.done.wait (%p683_p11), [#allocation2 + $0x1], 128 }
  0x7c   : > { %724 = vsyncadd (%p683_p11), [#allocation2 + $0x1], 4294967168  ;;  %p684_p12 = scmp.lt.s32.totalorder %s816_s8, %s789_s1 }
  0x7e   : > { %726 = dma.done.wait (%p684_p12), [#allocation2 + $0x2], 128 }
  0x7f   : > { %728 = vsyncadd (%p684_p12), [#allocation2 + $0x2], 4294967168  ;;  %p685_p13 = scmp.lt.s32.totalorder %s826_s14, %s789_s1 }
  0x81   : > { %730 = dma.done.wait (%p685_p13), [#allocation2 + $0x3], 128 }
  0x82   : > { %732 = vsyncadd (%p685_p13), [#allocation2 + $0x3], 4294967168  ;;  %p686_p0 = scmp.lt.s32.totalorder %s836_s21, %s789_s1 }
  0x84   : > { %734 = dma.done.wait (%p686_p0), [#allocation2 + $0x4], 128 }
  0x85   : > { %736 = vsyncadd (%p686_p0), [#allocation2 + $0x4], 4294967168  ;;  %p687_p1 = scmp.lt.s32.totalorder %s846_s28, %s789_s1 }
  0x87   : > { %738 = dma.done.wait (%p687_p1), [#allocation2 + $0x5], 128 }
  0x88   : > { %740 = vsyncadd (%p687_p1), [#allocation2 + $0x5], 4294967168  ;;  %p688_p2 = scmp.lt.s32.totalorder %s856_s9, %s789_s1 }
  0x8a   : > { %742 = dma.done.wait (%p688_p2), [#allocation2 + $0x6], 128 }
  0x8b   : > { %744 = vsyncadd (%p688_p2), [#allocation2 + $0x6], 4294967168  ;;  %p689_p3 = scmp.lt.s32.totalorder %s866_s16, %s789_s1 }
  0x8d   : > { %746 = dma.done.wait (%p689_p3), [#allocation2 + $0x7], 128 }
  0x8e   : > { %748 = vsyncadd (%p689_p3), [#allocation2 + $0x7], 4294967168 }
  0x8f PF: > { %s22_s18 = sadd.s32 1, %s751_s18  }
  0x90   : > { %p19_p4 = scmp.ge.s32.totalorder %s22_s18, 3  }
  0x92   :  { %21 = sbr.rel (!%p19_p4) target bundleno = 7 (0x7), region = 443 }
  0x97   :  { %497 = vsyncmov [#allocation2] }
  0x9a   :  { %s498_s0 = vpop.sfrf %497 }
  0x9b   :  { %p658_p5 = scmp.ne.s32.totalorder %s498_s0, 0 }
  0x9d   :  { %502 = shalt.err (%p658_p5)  }
  0x9e   :  { %504 = vsyncmov [#allocation2 + $0x1] }
  0xa1   :  { %s505_s23 = vpop.sfrf %504 }
  0xa2   :  { %p659_p6 = scmp.ne.s32.totalorder %s505_s23, 0 }
  0xa4   :  { %509 = shalt.err (%p659_p6)  }
  0xa5   :  { %511 = vsyncmov [#allocation2 + $0x2] }
  0xa8   :  { %s512_s29 = vpop.sfrf %511 }
  0xa9   :  { %p660_p7 = scmp.ne.s32.totalorder %s512_s29, 0 }
  0xab   :  { %516 = shalt.err (%p660_p7)  }
  0xac   :  { %518 = vsyncmov [#allocation2 + $0x3] }
  0xaf   :  { %s519_s1 = vpop.sfrf %518 }
  0xb0   :  { %p661_p8 = scmp.ne.s32.totalorder %s519_s1, 0 }
  0xb2   :  { %523 = shalt.err (%p661_p8)  }
  0xb3   :  { %525 = vsyncmov [#allocation2 + $0x4] }
  0xb6   :  { %s526_s8 = vpop.sfrf %525 }
  0xb7   :  { %p662_p9 = scmp.ne.s32.totalorder %s526_s8, 0 }
  0xb9   :  { %530 = shalt.err (%p662_p9)  }
  0xba   :  { %532 = vsyncmov [#allocation2 + $0x5] }
  0xbd   :  { %s533_s2 = vpop.sfrf %532 }
  0xbe   :  { %p663_p10 = scmp.ne.s32.totalorder %s533_s2, 0 }
  0xc0   :  { %537 = shalt.err (%p663_p10)  }
  0xc1   :  { %539 = vsyncmov [#allocation2 + $0x6] }
  0xc4   :  { %s540_s3 = vpop.sfrf %539 }
  0xc5   :  { %p664_p11 = scmp.ne.s32.totalorder %s540_s3, 0 }
  0xc7   :  { %544 = shalt.err (%p664_p11)  }
  0xc8   :  { %546 = vsyncmov [#allocation2 + $0x7] }
  0xcb   :  { %s547_s18 = vpop.sfrf %546 }
  0xcc   :  { %p665_p12 = scmp.ne.s32.totalorder %s547_s18, 0 }
  0xce   :  { %551 = shalt.err (%p665_p12)  }

</bundles_post_ra>
